<compile_context>
chip_gen: v5e
topology: v5e:2x2
jax: 0.10.0
libtpu: 0.0.40
codegen_flags: <defaults>
</compile_context>

<pallas_src>
import functools

import jax
import jax.numpy as jnp
from jax.experimental import pallas as pl
from jax.experimental.pallas import tpu as pltpu

_F32_BYTES = 4


def _chip_params():
    """Per-generation VMEM limit / working budget / per-tile budget / TensorCore count."""
    kind = ""
    try:
        kind = jax.devices()[0].device_kind.lower()
    except Exception:  # pragma: no cover - defensive
        pass
    if "v7" in kind:
        # 64 MiB physical VMEM: leave ~16 MiB headroom; 2 TCs share the "parallel" axis.
        return dict(vmem_limit=48 << 20, vmem_budget=40 << 20, tile_budget=5 << 20, num_tc=2)
    if "v6" in kind:
        # 128 MiB physical VMEM, single TC: big tiles, few grid steps.
        return dict(vmem_limit=96 << 20, vmem_budget=80 << 20, tile_budget=6 << 20, num_tc=1)
    if "v5e" in kind or "v5 lite" in kind or "v5lite" in kind:
        # ~820 GB/s HBM: 2 MiB tiles already amortize the per-step overhead.
        return dict(vmem_limit=48 << 20, vmem_budget=40 << 20, tile_budget=2 << 20, num_tc=1)
    # Unknown chip (v4 / v5p / future): assume the tightest VMEM and dual-core parity.
    return dict(vmem_limit=48 << 20, vmem_budget=40 << 20, tile_budget=4 << 20, num_tc=2)


def _select_tiles(BC, HW, itemsize, sublane_mult, tile_budget, vmem_budget, num_tc):
    """Pick (tile_bc, tile_hw). tile_hw == HW -> single-pass; tile_hw < HW -> two-pass."""

    def sp_cost(rows):
        # double-buffered input + output (native dtype) + ~3 full-tile f32 temporaries
        # (x upcast, centered, centered^2) live inside the kernel body.
        return rows * HW * (4 * itemsize + 3 * _F32_BYTES)

    row_cands = [d for d in range(sublane_mult, BC + 1, sublane_mult) if BC % d == 0]
    if BC not in row_cands:
        row_cands.append(BC)  # full extent is always a legal block dim
    row_cands.sort()
    min_rows = row_cands[0]

    # ---- single-pass first: x streamed from HBM exactly once ----
    if sp_cost(min_rows) <= vmem_budget:
        feasible = [r for r in row_cands if sp_cost(r) <= vmem_budget]
        in_budget = [r for r in feasible if r * HW * itemsize <= tile_budget]
        pool = in_budget if in_budget else [min(feasible)]
        if num_tc >= 2:
            # The "parallel" axis is sharded across TensorCores: prefer an even step count
            # so neither core ends up with up to 2x the work.
            even = [r for r in pool if (BC // r) % 2 == 0]
            if even:
                return max(even), HW
        return max(pool), HW

    # ---- two-pass fallback (huge H*W only): tile the spatial axis too ----
    def tp_cost(rows, cols):
        # 3-deep input pipeline + double-buffered output (native dtype) + f32 temps in-kernel.
        return rows * cols * (5 * itemsize + 2 * _F32_BYTES)

    col_cands = [d for d in range(128, HW + 1, 128) if HW % d == 0]
    best = None
    for rows in row_cands:
        for cols in col_cands:
            if tp_cost(rows, cols) > vmem_budget or rows * cols * itemsize > tile_budget:
                continue
            key = (rows * cols, cols)  # maximize tile area; tie-break on longer contiguous
            if best is None or key > best[0]:  # HBM row segments (larger cols)
                best = (key, rows, cols)
    if best is not None:
        return best[1], best[2]

    # TODO(synk): pathological H*W (no multiple-of-128 divisor under budget, e.g. a large
    # prime) would need padded/masked tiles; fall back to the smallest legal configuration
    # rather than silently blowing the budget by more than necessary.
    if col_cands:
        return min_rows, col_cands[0]
    return min_rows, HW


def _adain_single_pass_kernel(x_ref, w_ref, b_ref, o_ref, *, eps, inv_hw):
    # x_ref: (TILE_BC, HW)   w_ref/b_ref: (TILE_BC, 1) f32   o_ref: (TILE_BC, HW)
    x = x_ref[...].astype(jnp.float32)
    mean = jnp.sum(x, axis=-1, keepdims=True) * inv_hw
    centered = x - mean
    # Centered (biased) variance: robust to large DC offsets, matches F.batch_norm.
    var = jnp.sum(centered * centered, axis=-1, keepdims=True) * inv_hw
    a = jax.lax.rsqrt(var + eps) * w_ref[...]               # (TILE_BC, 1)
    o_ref[...] = (centered * a + b_ref[...]).astype(o_ref.dtype)   # fused apply


def _adain_two_pass_kernel(x_ref, w_ref, b_ref, o_ref, sum_ref, ssq_ref, *, eps, inv_hw):
    # grid = (n_bc, 2, n_hw): pass p=0 accumulates row stats, pass p=1 applies the affine.
    p = pl.program_id(1)
    j = pl.program_id(2)

    x = x_ref[...].astype(jnp.float32)

    @pl.when((p == 0) & (j == 0))
    def _():
        sum_ref[...] = jnp.zeros_like(sum_ref)
        ssq_ref[...] = jnp.zeros_like(ssq_ref)

    @pl.when(p == 0)
    def _():
        sum_ref[...] += jnp.sum(x, axis=-1, keepdims=True)
        ssq_ref[...] += jnp.sum(x * x, axis=-1, keepdims=True)

    @pl.when(p == 1)
    def _():
        mean = sum_ref[...] * inv_hw
        # E[x^2] - mean^2 keeps this path at 3 bytes moved/elem (centered form would need a
        # third streaming pass); clamp guards against f32 cancellation going negative.
        var = jnp.maximum(ssq_ref[...] * inv_hw - mean * mean, 0.0)
        a = jax.lax.rsqrt(var + eps) * w_ref[...]
        c = b_ref[...] - mean * a
        o_ref[...] = (x * a + c).astype(o_ref.dtype)


def adaptive_instance_norm_2d(x, weight, bias, *, eps=1e-5, tile_bc=None, tile_hw=None):
    """x: (B, C, H, W); weight, bias: (B*C,).  Returns (B, C, H, W)."""
    B, C, H, W = x.shape
    BC, HW = B * C, H * W
    assert weight.shape == (BC,) and bias.shape == (BC,)

    x2d = x.reshape(BC, HW)
    w2d = weight.reshape(BC, 1).astype(jnp.float32)  # pre-cast on host: no per-step casts
    b2d = bias.reshape(BC, 1).astype(jnp.float32)

    itemsize = jnp.dtype(x.dtype).itemsize
    sublane_mult = max(8, 32 // max(itemsize, 1))  # f32: 8, bf16: 16, int8/fp8: 32
    params = _chip_params()

    auto_bc, auto_hw = _select_tiles(
        BC, HW, itemsize, sublane_mult,
        params["tile_budget"], params["vmem_budget"], params["num_tc"])
    if tile_bc is None:
        tile_bc = auto_bc
    if tile_hw is None:
        tile_hw = auto_hw

    # TPU tiling constraints (dtype-aware sublane packing on the second-to-last dim).
    assert BC % tile_bc == 0, "tile_bc must divide B*C"
    assert tile_bc == BC or tile_bc % sublane_mult == 0, (
        f"tile_bc must be a multiple of {sublane_mult} for dtype {x.dtype} (or == B*C)")
    assert HW % tile_hw == 0, "tile_hw must divide H*W"
    assert tile_hw == HW or tile_hw % 128 == 0, "tile_hw must be a multiple of 128 (or == H*W)"

    inv_hw = 1.0 / HW

    if tile_hw == HW:
        # ---- single-pass: whole spatial extent resident per row tile ----
        kernel = functools.partial(_adain_single_pass_kernel, eps=eps, inv_hw=inv_hw)
        out2d = pl.pallas_call(
            kernel,
            out_shape=jax.ShapeDtypeStruct((BC, HW), x.dtype),
            grid_spec=pltpu.PrefetchScalarGridSpec(
                num_scalar_prefetch=0,
                grid=(BC // tile_bc,),
                in_specs=[
                    pl.BlockSpec((tile_bc, HW), lambda i: (i, 0)),
                    pl.BlockSpec((tile_bc, 1), lambda i: (i, 0)),
                    pl.BlockSpec((tile_bc, 1), lambda i: (i, 0)),
                ],
                out_specs=pl.BlockSpec((tile_bc, HW), lambda i: (i, 0)),
            ),
            compiler_params=pltpu.CompilerParams(
                dimension_semantics=("parallel",),
                vmem_limit_bytes=params["vmem_limit"],
            ),
        )(x2d, w2d, b2d)
    else:
        # ---- two-pass: tile the spatial axis; stats pass then apply pass ----
        kernel = functools.partial(_adain_two_pass_kernel, eps=eps, inv_hw=inv_hw)
        n_bc = BC // tile_bc
        n_hw = HW // tile_hw
        out2d = pl.pallas_call(
            kernel,
            out_shape=jax.ShapeDtypeStruct((BC, HW), x.dtype),
            grid_spec=pltpu.PrefetchScalarGridSpec(
                num_scalar_prefetch=0,
                grid=(n_bc, 2, n_hw),
                in_specs=[
                    # 3-deep pipeline on x: per-tile compute is tiny, so the extra buffer
                    # hides DMA latency at the p=0 -> p=1 and row-tile transitions.
                    pl.BlockSpec((tile_bc, tile_hw), lambda i, p, j: (i, j),
                                 pipeline_mode=pl.Buffered(3)),
                    pl.BlockSpec((tile_bc, 1), lambda i, p, j: (i, 0)),
                    pl.BlockSpec((tile_bc, 1), lambda i, p, j: (i, 0)),
                ],
                # During the stats pass (p==0) park the output window on block (i, 0);
                # it is only stored during the apply pass, so no garbage reaches HBM and
                # each output block is written back exactly once.
                out_specs=pl.BlockSpec((tile_bc, tile_hw), lambda i, p, j: (i, j * p)),
                scratch_shapes=[
                    pltpu.VMEM((tile_bc, 1), jnp.float32),  # per-row sum
                    pltpu.VMEM((tile_bc, 1), jnp.float32),  # per-row sum of squares
                ],
            ),
            compiler_params=pltpu.CompilerParams(
                dimension_semantics=("parallel", "arbitrary", "arbitrary"),
                vmem_limit_bytes=params["vmem_limit"],
            ),
        )(x2d, w2d, b2d)

    return out2d.reshape(B, C, H, W)


def _reference(x, weight, bias, eps=1e-5):
    # Pure-JAX reference (centered, biased variance) for sanity checking.
    B, C, H, W = x.shape
    xf = x.reshape(B * C, H * W).astype(jnp.float32)
    mean = jnp.mean(xf, axis=-1, keepdims=True)
    var = jnp.mean((xf - mean) ** 2, axis=-1, keepdims=True)
    y = (xf - mean) / jnp.sqrt(var + eps)
    y = y * weight.reshape(-1, 1).astype(jnp.float32) + bias.reshape(-1, 1).astype(jnp.float32)
    return y.reshape(B, C, H, W).astype(x.dtype)


if __name__ == "__main__":
    key = jax.random.PRNGKey(0)
    ks = jax.random.split(key, 12)

    # --- test 1: small module-consistent shape (single-pass path) ---
    B, C, H, W = 2, 4, 16, 16
    x = jax.random.normal(ks[0], (B, C, H, W), dtype=jnp.float32)
    # In the PyTorch module, weight/bias (shape (B*C,)) are assigned externally
    # (e.g. by an MLP in MUNIT/SDNet). Initialize deterministically here.
    weight = 1.0 + 0.1 * jax.random.normal(ks[1], (B * C,), dtype=jnp.float32)
    bias = 0.1 * jax.random.normal(ks[2], (B * C,), dtype=jnp.float32)

    out = jax.block_until_ready(adaptive_instance_norm_2d(x, weight, bias, eps=1e-5))
    ref = _reference(x, weight, bias, eps=1e-5)
    assert out.shape == (B, C, H, W)
    assert jnp.allclose(out, ref, atol=1e-4, rtol=1e-4), "single-pass mismatch vs reference"

    # --- test 2: exercise the HW-tiled two-pass path explicitly (parked-output + Buffered) ---
    B2, C2, H2, W2 = 2, 8, 32, 64
    x2 = jax.random.normal(ks[3], (B2, C2, H2, W2), dtype=jnp.float32)
    w2 = 1.0 + 0.1 * jax.random.normal(ks[4], (B2 * C2,), dtype=jnp.float32)
    b2 = 0.1 * jax.random.normal(ks[5], (B2 * C2,), dtype=jnp.float32)

    out2 = jax.block_until_ready(
        adaptive_instance_norm_2d(x2, w2, b2, eps=1e-5, tile_bc=8, tile_hw=256)
    )
    ref2 = _reference(x2, w2, b2, eps=1e-5)
    assert out2.shape == (B2, C2, H2, W2)
    assert jnp.allclose(out2, ref2, atol=1e-4, rtol=1e-4), "two-pass mismatch vs reference"

    # --- test 3: bf16 input exercises the dtype-aware (16-row) sublane granularity ---
    B3, C3, H3, W3 = 2, 8, 16, 32
    x3 = jax.random.normal(ks[6], (B3, C3, H3, W3), dtype=jnp.float32).astype(jnp.bfloat16)
    w3 = 1.0 + 0.1 * jax.random.normal(ks[7], (B3 * C3,), dtype=jnp.float32)
    b3 = 0.1 * jax.random.normal(ks[8], (B3 * C3,), dtype=jnp.float32)

    out3 = jax.block_until_ready(adaptive_instance_norm_2d(x3, w3, b3, eps=1e-5))
    ref3 = _reference(x3, w3, b3, eps=1e-5)
    assert out3.shape == (B3, C3, H3, W3)
    assert jnp.allclose(out3.astype(jnp.float32), ref3.astype(jnp.float32),
                        atol=1e-2, rtol=1e-2), "bf16 mismatch vs reference"

    # --- test 4: larger shape, auto tile selection with a multi-step single-pass grid ---
    B4, C4, H4, W4 = 2, 64, 64, 64
    x4 = jax.random.normal(ks[9], (B4, C4, H4, W4), dtype=jnp.float32)
    w4 = 1.0 + 0.1 * jax.random.normal(ks[10], (B4 * C4,), dtype=jnp.float32)
    b4 = 0.1 * jax.random.normal(ks[11], (B4 * C4,), dtype=jnp.float32)

    out4 = jax.block_until_ready(adaptive_instance_norm_2d(x4, w4, b4, eps=1e-5))
    ref4 = _reference(x4, w4, b4, eps=1e-5)
    assert out4.shape == (B4, C4, H4, W4)
    assert jnp.allclose(out4, ref4, atol=1e-4, rtol=1e-4), "auto-tiled mismatch vs reference"

    print("KERNEL_OK")
</pallas_src>

<mosaic_0001>
module attributes {stable_mosaic.version = 11 : i64} {
  func.func @_adain_single_pass_kernel(%arg0: i32, %arg1: memref<8x256xf32, #tpu.memory_space<vmem>>, %arg2: memref<8x1xf32, #tpu.memory_space<vmem>>, %arg3: memref<8x1xf32, #tpu.memory_space<vmem>>, %arg4: memref<8x256xf32, #tpu.memory_space<vmem>>) attributes {dimension_semantics = [#tpu.dimension_semantics<parallel>], iteration_bounds = array<i64: 1>, scalar_prefetch = 0 : i64, scratch_operands = 0 : i64, tpu.core_type = #tpu.core_type<tc>, window_params = [{transform_indices = @transform_0, window_bounds = array<i64: 8, 256>}, {transform_indices = @transform_1, window_bounds = array<i64: 8, 1>}, {transform_indices = @transform_2, window_bounds = array<i64: 8, 1>}, {transform_indices = @transform_3, window_bounds = array<i64: 8, 256>}]} {
    %c0 = arith.constant 0 : index
    %c0_0 = arith.constant 0 : index
    %0 = vector.load %arg1[%c0, %c0_0] : memref<8x256xf32, #tpu.memory_space<vmem>>, vector<8x256xf32>
    %cst = arith.constant dense<0.000000e+00> : vector<8xf32>
    %1 = vector.multi_reduction <add>, %0, %cst [1] : vector<8x256xf32> to vector<8xf32>
    %2 = vector.shape_cast %1 : vector<8xf32> to vector<8x1xf32>
    %cst_1 = arith.constant 3.906250e-03 : f32
    %3 = vector.broadcast %cst_1 : f32 to vector<8x1xf32>
    %4 = arith.mulf %2, %3 : vector<8x1xf32>
    %5 = vector.broadcast %4 : vector<8x1xf32> to vector<8x256xf32>
    %6 = arith.subf %0, %5 : vector<8x256xf32>
    %7 = arith.mulf %6, %6 : vector<8x256xf32>
    %cst_2 = arith.constant dense<0.000000e+00> : vector<8xf32>
    %8 = vector.multi_reduction <add>, %7, %cst_2 [1] : vector<8x256xf32> to vector<8xf32>
    %9 = vector.shape_cast %8 : vector<8xf32> to vector<8x1xf32>
    %cst_3 = arith.constant 3.906250e-03 : f32
    %10 = vector.broadcast %cst_3 : f32 to vector<8x1xf32>
    %11 = arith.mulf %9, %10 : vector<8x1xf32>
    %cst_4 = arith.constant 9.99999974E-6 : f32
    %12 = vector.broadcast %cst_4 : f32 to vector<8x1xf32>
    %13 = arith.addf %11, %12 : vector<8x1xf32>
    %14 = math.rsqrt %13 : vector<8x1xf32>
    %c0_5 = arith.constant 0 : index
    %c0_6 = arith.constant 0 : index
    %15 = vector.load %arg2[%c0_5, %c0_6] : memref<8x1xf32, #tpu.memory_space<vmem>>, vector<8x1xf32>
    %16 = arith.mulf %14, %15 : vector<8x1xf32>
    %17 = vector.broadcast %16 : vector<8x1xf32> to vector<8x256xf32>
    %18 = arith.mulf %6, %17 : vector<8x256xf32>
    %c0_7 = arith.constant 0 : index
    %c0_8 = arith.constant 0 : index
    %19 = vector.load %arg3[%c0_7, %c0_8] : memref<8x1xf32, #tpu.memory_space<vmem>>, vector<8x1xf32>
    %20 = vector.broadcast %19 : vector<8x1xf32> to vector<8x256xf32>
    %21 = arith.addf %18, %20 : vector<8x256xf32>
    %c0_9 = arith.constant 0 : index
    %c0_10 = arith.constant 0 : index
    %22 = vector.load %arg4[%c0_9, %c0_10] : memref<8x256xf32, #tpu.memory_space<vmem>>, vector<8x256xf32>
    tpu.vector_store %arg4[%c0_9, %c0_10], %21 {strides = array<i32>} : memref<8x256xf32, #tpu.memory_space<vmem>>, vector<8x256xf32>,
    return
  }
  func.func @transform_0(%arg0: i32) -> (i32, i32) {
    %c0_i32 = arith.constant 0 : i32
    %c0_i32_0 = arith.constant 0 : i32
    return %arg0, %c0_i32 : i32, i32
  }
  func.func @transform_1(%arg0: i32) -> (i32, i32) {
    %c0_i32 = arith.constant 0 : i32
    %c0_i32_0 = arith.constant 0 : i32
    return %arg0, %c0_i32 : i32, i32
  }
  func.func @transform_2(%arg0: i32) -> (i32, i32) {
    %c0_i32 = arith.constant 0 : i32
    %c0_i32_0 = arith.constant 0 : i32
    return %arg0, %c0_i32 : i32, i32
  }
  func.func @transform_3(%arg0: i32) -> (i32, i32) {
    %c0_i32 = arith.constant 0 : i32
    %c0_i32_0 = arith.constant 0 : i32
    return %arg0, %c0_i32 : i32, i32
  }
}

</mosaic_0001>

<bundles_post_ra>
// kernel: tpu_custom_call.1
= control target key start
LH: loop header
LB: loop body
LE: loop exit
PB: predicated region body
PF: predicated region fallthrough
CT: control target
= control target key end

     0   :  { %s144_s0 = inlined_call_operand.vmem [shape: f32[8,256], index: 0, kind: input, shape index: {}]   ;;  %s145_s1 = inlined_call_operand.vmem [shape: f32[8,1], index: 1, kind: input, shape index: {}]   ;;  %s146_s2 = inlined_call_operand.vmem [shape: f32[8,1], index: 2, kind: input, shape index: {}]   ;;  %s147_s3 = inlined_call_operand.hbm [shape: f32[8,256], index: 3, kind: output, shape index: {}]  }
   0x1   :  { %v15_v0 = vld [vmem:[%s144_s0] sm:$0xff]  ;;  %v16_v1 = vld [vmem:[%s144_s0 + $0x8] sm:$0xff] }
   0x2   :  { %8 = vsyncpa [#allocation3], 0  ;;  %v17_v2 = vadd.f32 %v16_v1, %v15_v0  ;;  %v107_v10 = vmov 0   ;;  %v40_v20 = vld [vmem:[%s145_s1] sm:$0xff]  ;;  %s108_s19 = smov [#allocation2]   ;;  %s66_s23 = sshll.u32 %s147_s3, 4  ;;  %s67_s23 = int_to_ptr.hbm [resolvable:$true] %s66_s23 }
   0x3   :  { %77 = vset.pattern.permute.xlu1 %v107_v10  ;;  %78 = vset.pattern.permute.xlu0 %v107_v10  ;;  %v49_v23 = vld [vmem:[%s146_s2] sm:$0xff]  ;;  %s64_s20 = sshll.u32 %s108_s19, 4  ;;  %s65_s20 = int_to_ptr.vmem [resolvable:$true] %s64_s20 }
   0x4   :  { %18 = vadd.xlane.f32.xlu0 %v17_v2 }
  0x77   :  { %v19_v3 = vpop.xlane.xlu0 %18 }
  0x78   :  { %v20_v4 = vmul.f32 0.00390625, %v19_v3 }
  0x7a   :  { %v21_v5 = vsub.f32 %v15_v0, %v20_v4  ;;  %v22_v6 = vsub.f32 %v16_v1, %v20_v4 }
  0x7c   :  { %v23_v7 = vmul.f32 %v21_v5, %v21_v5  ;;  %v24_v8 = vmul.f32 %v22_v6, %v22_v6 }
  0x7e   :  { %v25_v9 = vadd.f32 %v24_v8, %v23_v7 }
  0x80   :  { %26 = vadd.xlane.f32.xlu0 %v25_v9 }
  0xf3   :  { %v27_v11 = vpop.xlane.xlu0 %26 }
  0xf4   :  { %v28_v12 = vmul.f32 0.00390625, %v27_v11 }
  0xf6   :  { %v29_v13 = vadd.f32 1e-05, %v28_v12 }
  0xf8   :  { %79 = vrsqrt.f32 %v29_v13  ;;  %vm36_vm1 = vweird.f32 %v29_v13 }
  0xfe   :  { %v80_v14 = vpop.eup %79 }
  0xff   :  { %v31_v15 = vmul.f32 %v80_v14, %v29_v13  ;;  %vm37_vm0 = vweird.f32 %v80_v14 }
 0x100   :  { %vm38_vm2 = vmor %vm36_vm1, %vm37_vm0 }
 0x101   :  { %v32_v16 = vmul.f32 %v80_v14, %v31_v15 }
 0x103   :  { %v33_v17 = vmul.f32 0.5, %v32_v16 }
 0x105   :  { %v34_v18 = vsub.f32 1.5, %v33_v17 }
 0x107   :  { %v35_v19 = vmul.f32 %v80_v14, %v34_v18 }
 0x109   :  { %v39_v21 = vsel %vm38_vm2, %v80_v14, %v35_v19 }
 0x10a   :  { %v41_v22 = vmul.f32 %v40_v20, %v39_v21 }
 0x10c   :  { %44 = vperm.xlu1 %77, %v41_v22  }
 0x114   :  { %52 = vperm.xlu1 %77, %v49_v23  }
 0x17e   :  { %v45_v24 = vpop.permute.xlu1 %44 }
 0x17f   :  { %v47_v25 = vmul.f32 %v45_v24, %v21_v5  ;;  %v48_v26 = vmul.f32 %v45_v24, %v22_v6 }
 0x186   :  { %v53_v27 = vpop.permute.xlu1 %52 }
 0x187   :  { %v55_v28 = vadd.f32 %v53_v27, %v47_v25  ;;  %v56_v29 = vadd.f32 %v53_v27, %v48_v26 }
 0x189   :  { %57 = vst [vmem:[#allocation2] sm:$0xff] %v55_v28 }
 0x18a   :  { %58 = vst [vmem:[#allocation2 + $0x8] sm:$0xff] %v56_v29 }
 0x18b   :  { %69 = dma.vmem_to_hbm [thread:$0]  %s65_s20, 256, %s67_s23, [#allocation3]  }
 0x18c   :  { %105 = dma.done.wait [#allocation3], 256  }
 0x18d   :  { %106 = vsyncadd [#allocation3], 4294967040 }
 0x18e   :  { %74 = vsyncpa [#allocation3], 1 }

</bundles_post_ra>
